<compile_context>
chip_gen: v7x
topology: tpu7x:2x2x1
jax: 0.10.0
libtpu: 0.0.40
codegen_flags: <defaults>
</compile_context>

<pallas_src>
import functools
import math

import jax
import jax.numpy as jnp
from jax.experimental import pallas as pl
from jax.experimental.pallas import tpu as pltpu

BN_EPS = 1e-5
MATMUL_DTYPE = jnp.bfloat16      # MXU operand dtype; accumulation is f32.
FEAT_DTYPE = jnp.bfloat16        # HBM storage dtype of the growing feature stack.


def _round_up(x, m):
    return (x + m - 1) // m * m


@functools.lru_cache(maxsize=None)
def _roll_matches_jnp():
    """Detect once (tiny probe kernel) whether pltpu.roll follows jnp.roll's
    shift convention, so the tap lane-shifts are sign-robust."""
    def kernel(x_ref, o_ref):
        o_ref[...] = pltpu.roll(x_ref[...], 1, 1)

    with jax.ensure_compile_time_eval():   # safe even if first hit while tracing
        x = jax.lax.broadcasted_iota(jnp.int32, (8, 128), 1)
        y = pl.pallas_call(
            kernel, out_shape=jax.ShapeDtypeStruct((8, 128), jnp.int32))(x)
        first = int(jax.device_get(y)[0, 0])
    assert first in (1, 127), f"unexpected pltpu.roll behaviour: {first}"
    return first == 127          # jnp.roll(x, 1, 1)[0, 0] == x[0, -1] == 127


@functools.lru_cache(maxsize=None)
def _vmem_cap_bytes():
    """Generation-specific scoped-VMEM cap (None -> leave the compiler default)."""
    try:
        kind = jax.devices()[0].device_kind.lower()
    except Exception:
        return None
    if "v7" in kind or "7x" in kind:
        return 56 * 1024 * 1024           # 64 MiB physical: leave Mosaic headroom
    if any(t in kind for t in ("v4", "v5", "v6")):
        return 100 * 1024 * 1024          # 128 MiB physical
    return None


def _vmem_limit(cin_pad, gp, M, feat_bytes, mm_bytes):
    """Honest per-grid-step footprint estimate (double-buffered I/O + temporaries)."""
    cap = _vmem_cap_bytes()
    if cap is None:
        return None
    io = (2 * cin_pad * M * feat_bytes        # feature input block (double buffered)
          + 2 * gp * M * feat_bytes           # in-place output block
          + 2 * 9 * gp * cin_pad * mm_bytes   # conv tap weights
          + 2 * 2 * cin_pad * 128 * 4         # scale / shift (lane-padded (C,1))
          + 2 * 2 * gp * 128 * 4)             # fused stats accumulators
    tmp = (2 * cin_pad * M * 4                # f32 activations + one shifted tap
           + cin_pad * M * mm_bytes           # bf16 matmul operand
           + 2 * gp * M * 4                   # f32 accumulator + stats temp
           + gp * M * feat_bytes              # quantized output tile
           + 16 * M)                          # iota / masks
    need = int(1.5 * (io + tmp))
    return max(32 * 1024 * 1024, min(cap, need))


# ---------------------------------------------------------------------------
# Fused layer kernel: BN(scale/shift) + ReLU + 3x3 conv (9 per-tap matmuls)
# + in-place slice store + fused per-channel batch statistics of the output.
# ---------------------------------------------------------------------------
def _make_layer_kernel(H, W, growth_pad, matmul_dtype, roll_matches_jnp):
    M = H * W

    def lane_shift(y, delta):
        """z[:, m] = y[:, m + delta] with wrap-around (callers mask the wrap)."""
        if delta == 0:
            return y
        amount = (-delta) % M if roll_matches_jnp else delta % M
        return pltpu.roll(y, amount, 1)       # lane rotation rides the XLU

    def kernel(feat_ref, scale_ref, shift_ref, w_ref, out_ref, sum_ref, sq_ref):
        # Fused batch-stat accumulators for this layer's output (init on image 0).
        @pl.when(pl.program_id(0) == 0)
        def _init():
            sum_ref[...] = jnp.zeros_like(sum_ref)
            sq_ref[...] = jnp.zeros_like(sq_ref)

        # BatchNorm (global batch stats pre-folded into scale/shift) + ReLU, f32.
        x = feat_ref[0].astype(jnp.float32)                       # (Cin_pad, M)
        y = jnp.maximum(x * scale_ref[...] + shift_ref[...], 0.0)

        # The 8 border masks depend only on (dh, dw): compute them once per step.
        m_ids = jax.lax.broadcasted_iota(jnp.int32, (1, M), 1)
        h_ids, w_ids = m_ids // W, m_ids % W
        masks = {}
        for dh in (-1, 0, 1):
            for dw in (-1, 0, 1):
                if dh == 0 and dw == 0:
                    continue
                masks[(dh, dw)] = ((h_ids + dh >= 0) & (h_ids + dh < H) &
                                   (w_ids + dw >= 0) & (w_ids + dw < W))

        # 3x3 conv = 9 per-tap MXU matmuls accumulated in f32 (no im2col buffer).
        acc = jnp.zeros((growth_pad, M), jnp.float32)
        for kh in range(3):
            for kw in range(3):
                dh, dw = kh - 1, kw - 1
                if dh == 0 and dw == 0:
                    z = y
                else:
                    shifted = lane_shift(y, dh * W + dw)
                    z = jnp.where(masks[(dh, dw)], shifted, 0.0)
                acc = acc + jnp.dot(w_ref[kh * 3 + kw], z.astype(matmul_dtype),
                                    preferred_element_type=jnp.float32)

        out_q = acc.astype(out_ref.dtype)
        out_ref[0] = out_q                    # lane-dense in-place slice store

        # Stats of the stored (quantized) feature, as later layers will read it.
        of = out_q.astype(jnp.float32)
        sum_ref[...] += jnp.sum(of, axis=1, keepdims=True)
        sq_ref[...] += jnp.sum(of * of, axis=1, keepdims=True)

    return kernel


def _dense_layer(feat_buf, scale, shift, w_taps, *, H, W, cin_pad, growth_pad):
    """One dense layer.  Updates the padded feature stack in place and returns
    (new_stack, out_channel_sum (gp,1), out_channel_sumsq (gp,1))."""
    N, c_total_pad, M = (int(d) for d in feat_buf.shape)
    out_blk = cin_pad // growth_pad          # channel block this layer writes into
    feat_bytes = jnp.dtype(feat_buf.dtype).itemsize
    mm_bytes = jnp.dtype(w_taps.dtype).itemsize
    kernel = _make_layer_kernel(H, W, growth_pad, w_taps.dtype, _roll_matches_jnp())

    return pl.pallas_call(
        kernel,
        grid=(N,),
        in_specs=[
            pl.BlockSpec((1, cin_pad, M), lambda n: (n, 0, 0)),            # features
            pl.BlockSpec((cin_pad, 1), lambda n: (0, 0)),                  # BN scale
            pl.BlockSpec((cin_pad, 1), lambda n: (0, 0)),                  # BN shift
            pl.BlockSpec((9, growth_pad, cin_pad), lambda n: (0, 0, 0)),   # taps
        ],
        out_specs=(
            pl.BlockSpec((1, growth_pad, M), lambda n: (n, out_blk, 0)),   # slice
            pl.BlockSpec((growth_pad, 1), lambda n: (0, 0)),               # sum
            pl.BlockSpec((growth_pad, 1), lambda n: (0, 0)),               # sumsq
        ),
        out_shape=(
            jax.ShapeDtypeStruct((N, c_total_pad, M), feat_buf.dtype),
            jax.ShapeDtypeStruct((growth_pad, 1), jnp.float32),
            jax.ShapeDtypeStruct((growth_pad, 1), jnp.float32),
        ),
        input_output_aliases={0: 0},          # write in place into the feature stack
        compiler_params=pltpu.CompilerParams(
            # Batch axis is a reduction axis for the fused stats accumulators.
            dimension_semantics=("arbitrary",),
            vmem_limit_bytes=_vmem_limit(cin_pad, growth_pad, M,
                                         feat_bytes, mm_bytes),
        ),
    )(feat_buf, scale, shift, w_taps)


# ---------------------------------------------------------------------------
# Parameter packing into the padded channel layout.
# ---------------------------------------------------------------------------
def _scatter_channels(vec, src_slices, cin_pad):
    """Place real per-channel values (torch.cat order) into the padded layout."""
    out = jnp.zeros((cin_pad,), vec.dtype)
    r0 = 0
    for p_lo, wd in src_slices:
        out = out.at[p_lo:p_lo + wd].set(vec[r0:r0 + wd])
        r0 += wd
    return out


def _pack_conv_weight_taps(w_oihw, src_slices, cin_pad, growth_pad, dtype):
    """(growth, Cin_real, 3, 3) OIHW -> (9, growth_pad, Cin_pad) per-tap matrices,
    tap index t = kh*3 + kw, padded rows/columns are zero."""
    g = int(w_oihw.shape[0])
    w9 = jnp.transpose(w_oihw, (2, 3, 0, 1)).reshape(9, g, int(w_oihw.shape[1]))
    wt = jnp.zeros((9, growth_pad, cin_pad), jnp.float32)
    r0 = 0
    for p_lo, wd in src_slices:
        wt = wt.at[:, :g, p_lo:p_lo + wd].set(w9[:, :, r0:r0 + wd])
        r0 += wd
    return wt.astype(dtype)


# ---------------------------------------------------------------------------
# DenseBlock forward.
# ---------------------------------------------------------------------------
def dense_block_forward(x_nchw, params, matmul_dtype=MATMUL_DTYPE,
                        feat_dtype=FEAT_DTYPE):
    """x: (N, C0, H, W) f32 -> (N, C0 + L*growth, H, W) f32."""
    N, C0, H, W = (int(d) for d in x_nchw.shape)
    M = H * W
    L = len(params)
    growth = int(params[0][2].shape[0])
    count = float(N * M)

    ch_align = 16 if jnp.dtype(feat_dtype).itemsize == 2 else 8
    gp = _round_up(growth, ch_align)          # padded growth slice
    c0p = _round_up(C0, gp)                   # padded input slice (multiple of gp)
    c_total_pad = c0p + L * gp

    # Real-channel slices inside the padded stack, in torch.cat order.
    src_slices = [(0, C0)] + [(c0p + j * gp, growth) for j in range(L)]

    # Single growing feature stack: channels on sublanes, H*W on the 128-lane axis.
    x_flat = x_nchw.reshape(N, C0, M).astype(feat_dtype)
    feat = jnp.zeros((N, c_total_pad, M), feat_dtype).at[:, :C0, :].set(x_flat)

    # Per-channel batch statistics of the (quantized) input, computed once.
    xf = x_flat.astype(jnp.float32)
    sums = jnp.zeros((c0p,), jnp.float32).at[:C0].set(jnp.sum(xf, axis=(0, 2)))
    sqs = jnp.zeros((c0p,), jnp.float32).at[:C0].set(jnp.sum(xf * xf, axis=(0, 2)))

    for i, (gamma, beta, w) in enumerate(params):
        cin_pad = c0p + i * gp
        srcs = src_slices[:i + 1]
        gamma_p = _scatter_channels(gamma.astype(jnp.float32), srcs, cin_pad)
        beta_p = _scatter_channels(beta.astype(jnp.float32), srcs, cin_pad)

        # Fold train-mode BatchNorm (biased variance, eps=1e-5) into scale/shift.
        # NOTE: E[x^2]-E[x]^2 in f32 can lose precision for very large N*H*W.
        mean = sums / count
        var = jnp.maximum(sqs / count - mean * mean, 0.0)
        scale = gamma_p * jax.lax.rsqrt(var + BN_EPS)
        shift = beta_p - mean * scale

        w_taps = _pack_conv_weight_taps(w, srcs, cin_pad, gp, matmul_dtype)

        feat, s_new, q_new = _dense_layer(
            feat, scale.reshape(cin_pad, 1), shift.reshape(cin_pad, 1), w_taps,
            H=H, W=W, cin_pad=cin_pad, growth_pad=gp)
        # TODO(synk): F.dropout skipped - dropRate defaults to 0.0 (a no-op).

        sums = jnp.concatenate([sums, s_new[:, 0]])
        sqs = jnp.concatenate([sqs, q_new[:, 0]])

    # Strip the channel padding back out (single gather), restore NCHW f32.
    y = jnp.concatenate([feat[:, lo:lo + wd, :] for lo, wd in src_slices], axis=1)
    return y.astype(jnp.float32).reshape(N, C0 + L * growth, H, W)


def init_params(key, nb_layers, in_planes, growth_rate):
    """Deterministic parameters matching the PyTorch module shapes/defaults."""
    params = []
    for i in range(nb_layers):
        cin = in_planes + i * growth_rate
        key, wk = jax.random.split(key)
        bound = 1.0 / math.sqrt(cin * 9)   # ~ kaiming-uniform(a=sqrt(5)) bound
        w = jax.random.uniform(wk, (growth_rate, cin, 3, 3), jnp.float32,
                               minval=-bound, maxval=bound)       # OIHW
        gamma = jnp.ones((cin,), jnp.float32)    # BN weight default
        beta = jnp.zeros((cin,), jnp.float32)    # BN bias default
        params.append((gamma, beta, w))
    return params


# ---------------------------------------------------------------------------
# Pure-JAX references.
# ---------------------------------------------------------------------------
def reference_forward_f32(x_nchw, params):
    """Full-precision reference of the PyTorch module (train-mode BN)."""
    x = x_nchw.astype(jnp.float32)
    for gamma, beta, w in params:
        mean = jnp.mean(x, axis=(0, 2, 3))
        var = jnp.maximum(jnp.mean(x * x, axis=(0, 2, 3)) - mean * mean, 0.0)
        scale = gamma * jax.lax.rsqrt(var + BN_EPS)
        shift = beta - mean * scale
        y = jnp.maximum(x * scale[None, :, None, None]
                        + shift[None, :, None, None], 0.0)
        out = jax.lax.conv_general_dilated(
            y, w, (1, 1), ((1, 1), (1, 1)),
            dimension_numbers=("NCHW", "OIHW", "NCHW"),
            preferred_element_type=jnp.float32,
            precision=jax.lax.Precision.HIGHEST)
        x = jnp.concatenate([x, out], axis=1)
    return x


def reference_forward_matched(x_nchw, params, matmul_dtype=MATMUL_DTYPE,
                              feat_dtype=FEAT_DTYPE):
    """Reference with the kernel's dtype policy (bf16 features / bf16 MXU operands)."""
    feats = [x_nchw.astype(feat_dtype)]
    for gamma, beta, w in params:
        x = jnp.concatenate(feats, axis=1).astype(jnp.float32)
        mean = jnp.mean(x, axis=(0, 2, 3))
        var = jnp.maximum(jnp.mean(x * x, axis=(0, 2, 3)) - mean * mean, 0.0)
        scale = gamma * jax.lax.rsqrt(var + BN_EPS)
        shift = beta - mean * scale
        y = jnp.maximum(x * scale[None, :, None, None]
                        + shift[None, :, None, None], 0.0)
        out = jax.lax.conv_general_dilated(
            y.astype(matmul_dtype), w.astype(matmul_dtype),
            (1, 1), ((1, 1), (1, 1)),
            dimension_numbers=("NCHW", "OIHW", "NCHW"),
            preferred_element_type=jnp.float32)
        feats.append(out.astype(feat_dtype))
    return jnp.concatenate(feats, axis=1).astype(jnp.float32)


if __name__ == "__main__":
    nb_layers, in_planes, growth_rate = 3, 4, 4
    N, H, W = 2, 16, 16

    key = jax.random.PRNGKey(0)
    key, xk = jax.random.split(key)
    x = jax.random.normal(xk, (N, in_planes, H, W), jnp.float32)   # NCHW input
    params = init_params(key, nb_layers, in_planes, growth_rate)

    _roll_matches_jnp()                      # one-time device probe, outside jit

    fwd = jax.jit(dense_block_forward)
    out = jax.block_until_ready(fwd(x, params))
    assert out.shape == (N, in_planes + nb_layers * growth_rate, H, W)

    # Tight check against a reference using the same dtype policy.
    ref_matched = reference_forward_matched(x, params)
    assert jnp.allclose(out, ref_matched, atol=1e-2, rtol=1e-2), (
        "mismatch vs dtype-matched reference: "
        f"{float(jnp.max(jnp.abs(out - ref_matched)))}")

    # Looser sanity check against the full-precision f32 reference.
    ref_f32 = reference_forward_f32(x, params)
    assert jnp.allclose(out, ref_f32, atol=1e-1, rtol=1e-1), (
        f"mismatch vs f32 reference: {float(jnp.max(jnp.abs(out - ref_f32)))}")

    print("KERNEL_OK")
</pallas_src>

<mosaic_0001>
module attributes {stable_mosaic.version = 11 : i64} {
  func.func @kernel(%arg0: memref<8x128xi32, #tpu.memory_space<vmem>>, %arg1: memref<8x128xi32, #tpu.memory_space<vmem>>) attributes {dimension_semantics = [], scalar_prefetch = 0 : i64, scratch_operands = 0 : i64, tpu.core_type = #tpu.core_type<tc>} {
    %c0 = arith.constant 0 : index
    %c0_0 = arith.constant 0 : index
    %0 = vector.load %arg0[%c0, %c0_0] : memref<8x128xi32, #tpu.memory_space<vmem>>, vector<8x128xi32>
    %c1_i32 = arith.constant 1 : i32
    %1 = tpu.dynamic_rotate %0 by %c1_i32 dim 1 : vector<8x128xi32>, i32 -> vector<8x128xi32>
    %c0_1 = arith.constant 0 : index
    %c0_2 = arith.constant 0 : index
    %2 = vector.load %arg1[%c0_1, %c0_2] : memref<8x128xi32, #tpu.memory_space<vmem>>, vector<8x128xi32>
    tpu.vector_store %arg1[%c0_1, %c0_2], %1 {strides = array<i32>} : memref<8x128xi32, #tpu.memory_space<vmem>>, vector<8x128xi32>,
    return
  }
}

</mosaic_0001>

<bundles_post_ra>
// kernel: tpu_custom_call.1
= control target key start
LH: loop header
LB: loop body
LE: loop exit
PB: predicated region body
PF: predicated region fallthrough
CT: control target
= control target key end

     0   :  { %6 = vsyncpa [#allocation3], 0  ;;  %s128_s0 = inlined_call_operand.hbm [shape: s32[8,128], index: 0, kind: input, shape index: {}]   ;;  %s129_s1 = inlined_call_operand.hbm [shape: s32[8,128], index: 1, kind: output, shape index: {}]  }
   0x1   :  { %7 = vsyncpa [#allocation4], 0  ;;  %s91_s6 = smov [#allocation2]   ;;  %s43_s10 = scalar_lea.hbm %s128_s0, 128 }
   0x2   :  { %s14_s7 = sshll.u32 %s91_s6, 4  ;;  %p44_p0 = scmp.ne.s32.totalorder %s128_s0, %s43_s10  ;;  %s15_s7 = int_to_ptr.vmem [resolvable:$true] %s14_s7 }
   0x3   :  { %p47_p1 = scmp.lt.u32.totalorder %s43_s10, %s128_s0 }
   0x5   :  { %p49_p2 = pnand %p47_p1, %p44_p0 }
   0x7   :  { %52 = shalt.err (!%p49_p2)
}
   0x8   :  { %s53_s15 = scalar_lea.vmem %s15_s7, 128  ;;  %p58_p4 = scmp.lt.s32.totalorder %s15_s7, %s15_s7 }
   0x9   :  { %p54_p3 = scmp.ne.s32.totalorder %s15_s7, %s53_s15  ;;  %p59_p5 = scmp.lt.s32.totalorder %s53_s15, %s53_s15 }
   0xb   :  { %p60_p6 = por %p59_p5, %p58_p4 }
   0xd   :  { %p61_p7 = pnand %p60_p6, %p54_p3 }
   0xf   :  { %64 = shalt.err (!%p61_p7)
}
  0x10   :  { %17 = dma.hbm_to_vmem [thread:$0]  %s128_s0, 128, %s15_s7, [#allocation3]  }
  0x11   :  { %87 = dma.done.wait [#allocation3], 128  }
  0x12   :  { %88 = vsyncadd [#allocation3], 4294967168  ;;  %v21_v0 = vld [vmem:[#allocation2] sm:$0xff]  ;;  %s92_s18 = smov 1   ;;  %s93_s19 = smov [#allocation5]  }
  0x13   :  { %22 = vrot.lane.b32.xlu0 %v21_v0, %s92_s18  ;;  %s31_s20 = sshll.u32 %s93_s19, 4  ;;  %s32_s20 = int_to_ptr.vmem [resolvable:$true] %s31_s20 }
  0x14   :  { %s65_s21 = scalar_lea.vmem %s32_s20, 128  ;;  %p70_p9 = scmp.lt.s32.totalorder %s32_s20, %s32_s20 }
  0x15   :  { %p66_p8 = scmp.ne.s32.totalorder %s32_s20, %s65_s21  ;;  %p71_p10 = scmp.lt.s32.totalorder %s65_s21, %s65_s21 }
  0x17   :  { %p72_p11 = por %p71_p10, %p70_p9 }
  0x19   :  { %p73_p12 = pnand %p72_p11, %p66_p8 }
  0x85   :  { %v23_v1 = vpop.permute.xlu0 %22 }
  0x86   :  { %24 = vst [vmem:[#allocation5] sm:$0xff] %v23_v1 }
  0x87   :  { %76 = shalt.err (!%p73_p12)
}
  0x88   :  { %s77_s0 = scalar_lea.hbm %s129_s1, 128 }
  0x89   :  { %p78_p13 = scmp.ne.s32.totalorder %s129_s1, %s77_s0  ;;  %p81_p0 = scmp.lt.u32.totalorder %s77_s0, %s129_s1 }
  0x8b   :  { %p83_p1 = pnand %p81_p0, %p78_p13 }
  0x8d   :  { %86 = shalt.err (!%p83_p1)
}
  0x8e   :  { %34 = dma.vmem_to_hbm [thread:$0]  %s32_s20, 128, %s129_s1, [#allocation4]  }
  0x8f   :  { %89 = dma.done.wait [#allocation4], 128  }
  0x90   :  { %90 = vsyncadd [#allocation4], 4294967168 }
  0x91   :  { %38 = vsyncpa [#allocation3], 1 }
  0x92   :  { %39 = vsyncpa [#allocation4], 1 }

</bundles_post_ra>
